<compile_context>
chip_gen: v5e
topology: v5e:2x2
jax: 0.10.0
libtpu: 0.0.40
codegen_flags: <defaults>
</compile_context>

<pallas_src>
import math
import functools

import jax
import jax.numpy as jnp
from jax import lax
from jax.experimental import pallas as pl
from jax.experimental.pallas import tpu as pltpu

MIN_NORM = 1e-15
EPS_F32 = 4e-3          # PoincareBall.eps[torch.float32]
ARTANH_CLAMP = 1e-7     # f32-safe stand-in for torch's 1e-15 clamp (1-1e-15 == 1 in f32)


# ----------------------------- shared math helpers (pure jnp) ----------------

def _artanh(x):
    x = jnp.clip(x, -1.0 + ARTANH_CLAMP, 1.0 - ARTANH_CLAMP)
    return 0.5 * (jnp.log1p(x) - jnp.log1p(-x))


def _norm_lastdim(x):
    return jnp.maximum(jnp.sqrt(jnp.sum(x * x, axis=-1, keepdims=True)), MIN_NORM)


def _proj(x, sqrt_c):
    norm = _norm_lastdim(x)
    maxnorm = (1.0 - EPS_F32) / sqrt_c
    return jnp.where(norm > maxnorm, x / norm * maxnorm, x)


def _expmap0(u, sqrt_c):
    u_norm = _norm_lastdim(u)
    return jnp.tanh(sqrt_c * u_norm) * u / (sqrt_c * u_norm)


def _logmap0(p, sqrt_c):
    p_norm = _norm_lastdim(p)
    return _artanh(sqrt_c * p_norm) * p / (sqrt_c * p_norm)


def _mobius_add(x, y, c):
    x2 = jnp.sum(x * x, axis=-1, keepdims=True)
    y2 = jnp.sum(y * y, axis=-1, keepdims=True)
    xy = jnp.sum(x * y, axis=-1, keepdims=True)
    num = (1.0 + 2.0 * c * xy + c * y2) * x + (1.0 - c * x2) * y
    denom = 1.0 + 2.0 * c * xy + c * c * x2 * y2
    return num / jnp.maximum(denom, MIN_NORM)


# ----------------------------- Pallas kernel ---------------------------------

def _epilogue(mx, ss_x, hb, o_ref, *, c, c_b2, approx_recip):
    """Everything after the matmul: mobius_matvec tail, bias mobius_add, HypAct.

    Analytic-norm reuse: norms that are known in closed form (after the matvec
    scaling and after expmap0) are not re-reduced; the proj() after mobius_add
    shares its sumsq/rsqrt with the following logmap0.
    """
    sqrt_c = math.sqrt(c)
    inv_sqrt_c = 1.0 / sqrt_c
    maxnorm = (1.0 - EPS_F32) / sqrt_c
    inv_maxnorm = 1.0 / maxnorm

    def sumsq(v):
        return jnp.sum(v * v, axis=-1, keepdims=True)

    def norm_inv(ss):
        ss = jnp.maximum(ss, MIN_NORM * MIN_NORM)
        inv = lax.rsqrt(ss)                      # one EUP op instead of sqrt + divide
        return ss * inv, inv

    def recip(v):
        return pl.reciprocal(v, approx=True) if approx_recip else 1.0 / v

    # ---- HypLinear: mobius_matvec(W, x, c) tail + proj (analytic norm, no reduce) ----
    x_norm, inv_x_norm = norm_inv(ss_x)
    ss_mx = sumsq(mx)
    mx_norm, inv_mx_norm = norm_inv(ss_mx)
    r = mx_norm * inv_x_norm * _artanh(sqrt_c * x_norm)
    norm1 = jnp.tanh(r) * inv_sqrt_c             # ||mobius_matvec(W,x)||  (> 0)
    norm1c = jnp.minimum(norm1, maxnorm)         # ||proj(.)||
    zero_row = ss_mx == 0.0                      # torch: all(mx == 0, dim=-1)
    res = jnp.where(zero_row, 0.0, mx * (norm1c * inv_mx_norm))
    a2 = jnp.where(zero_row, 0.0, norm1c * norm1c)   # sumsq(res), analytic

    # ---- bias: mobius_add(res, hyp_bias) -> proj ----
    ab = jnp.sum(res * hb, axis=-1, keepdims=True)
    t1 = 1.0 + 2.0 * c * ab
    num = (t1 + c_b2) * res + (1.0 - c * a2) * hb
    den = t1 + (c * a2) * c_b2                   # 1 + 2c<a,b> + c^2 |a|^2 |b|^2
    madd = num * recip(jnp.maximum(den, MIN_NORM))
    norm2, inv2 = norm_inv(sumsq(madd))
    over2 = norm2 > maxnorm
    res2 = jnp.where(over2, madd * (maxnorm * inv2), madd)
    p_norm = jnp.minimum(norm2, maxnorm)         # ||res2||  (>= MIN_NORM)
    inv_p = jnp.where(over2, inv_maxnorm, inv2)  # reused by logmap0 (no new reduce)

    # ---- HypAct: relu(logmap0) -> proj_tan0 (identity) -> proj(expmap0) ----
    xt = jnp.maximum(res2 * (_artanh(sqrt_c * p_norm) * (inv_p * inv_sqrt_c)), 0.0)
    u_norm, inv_u = norm_inv(sumsq(xt))
    norm3 = jnp.tanh(sqrt_c * u_norm) * inv_sqrt_c      # ||expmap0(xt)||, analytic
    out_scale = jnp.minimum(norm3, maxnorm) * inv_u     # proj without a new reduce
    o_ref[...] = (xt * out_scale).astype(o_ref.dtype)


def hnn_kernel(x_ref, wt_ref, hb_ref, o_ref, ssx_ref, *, c, c_b2, approx_recip):
    """Grid = (row_tiles, k_tiles).  mx is accumulated in-place in the f32 output
    block across the (innermost, "arbitrary") K axis; ss_x in a small VMEM scratch.
    The manifold epilogue runs only on the last K step."""
    k = pl.program_id(1)

    @pl.when(k == 0)
    def _():
        o_ref[...] = jnp.zeros_like(o_ref)
        ssx_ref[...] = jnp.zeros_like(ssx_ref)

    x = x_ref[...]                                        # (tile_n, tk), f32 or bf16
    o_ref[...] += jnp.dot(x.astype(wt_ref.dtype), wt_ref[...],
                          preferred_element_type=jnp.float32)      # MXU
    xf = x.astype(jnp.float32)
    ssx_ref[...] += jnp.sum(xf * xf, axis=-1, keepdims=True)

    @pl.when(k == pl.num_programs(1) - 1)
    def _():
        _epilogue(o_ref[...], ssx_ref[...], hb_ref[...].astype(jnp.float32),
                  o_ref, c=c, c_b2=c_b2, approx_recip=approx_recip)


# ----------------------------- wrapper ----------------------------------------

def _round_up(v, m):
    return (v + m - 1) // m * m


def _vmem_capacity_bytes():
    # Generation-aware: 64 MiB per TensorCore on v7x, 128 MiB on v5e/v6e.
    try:
        return int(pltpu.get_tpu_info().vmem_capacity_bytes)
    except Exception:
        return 64 * 1024 * 1024   # conservative fallback


def hnn_layer(x, weight, bias, c, *, tile_n=256, bf16_matmul=False,
              approx_recip=False, force_tk=None):
    """HNNLayer forward.  x: (N, in); weight: (out, in) (PyTorch layout); bias: (out,).

    Notes:
      * artanh clamp is 1e-7 (f32-safe) vs torch's 1e-15 — differs only for points
        within ~1e-7 of the ball boundary.
      * the analytic-norm reuse reorders a few f32 roundings vs. the reference
        (observed differences are O(1e-5) near the ball boundary).
      * weight / hyp_bias / c_b2 prep below should be cached across calls in real use
        (c_b2 is baked in as a Python constant, which also makes this prep eager).
    """
    n, in_f = x.shape
    out_f = weight.shape[0]
    assert weight.shape == (out_f, in_f)
    c = float(c)
    sqrt_c = math.sqrt(c)

    x_dtype = jnp.bfloat16 if bf16_matmul else jnp.float32
    w_dtype = x_dtype
    x_bytes = 2 if bf16_matmul else 4
    w_bytes = x_bytes
    row_align = 16 if bf16_matmul else 8          # bf16 packs 16 sublanes per vreg

    # Lane-dense feature padding (zero padding is exact for all the manifold math).
    in_p = _round_up(in_f, 128)
    out_p = _round_up(out_f, 128)

    # ---- generation-aware VMEM budget ----
    vmem_cap = _vmem_capacity_bytes()
    vmem_limit = min(int(0.75 * vmem_cap), 96 * 1024 * 1024)
    budget = int(0.65 * vmem_limit)

    def vmem_est(tn, tk_, nk_w):
        return (2 * tn * tk_ * x_bytes             # double-buffered x tiles
                + 2 * tn * out_p * 4               # double-buffered f32 out tiles
                + nk_w * tk_ * out_p * w_bytes     # weight (1x when grid-invariant)
                + out_p * 4                        # hyp_bias (single-buffered)
                + tn * 128 * 4                     # ss_x scratch (lane padded)
                + 4 * tn * out_p * 4)              # epilogue f32 temporaries headroom

    # ---- row tile: as large as possible but >= 2 row grid steps when n allows ----
    tile_n = max(row_align, _round_up(min(int(tile_n), n), row_align))
    tile_n = min(tile_n, max(row_align, _round_up(-(-n // 2), row_align)))

    # ---- K (in_features) tiling only when the resident weight breaks the budget ----
    if force_tk is not None:
        tk = min(_round_up(int(force_tk), 128), in_p)
    elif vmem_est(row_align, in_p, 1) <= budget:
        tk = in_p                                  # weight fully resident
    else:
        tk = in_p
        while tk > 128 and vmem_est(row_align, tk, 2) > budget:
            tk = max(128, _round_up(tk // 2, 128))

    in_pp = _round_up(in_p, tk)
    k_tiles = in_pp // tk
    nk_w = 1 if k_tiles == 1 else 2
    while tile_n > row_align and vmem_est(tile_n, tk, nk_w) > budget:
        tile_n = max(row_align, _round_up(tile_n // 2, row_align))
    n_p = _round_up(n, tile_n)

    # ---- parameter prep (cache across calls in real use) ----
    wt = jnp.zeros((in_pp, out_p), jnp.float32).at[:in_f, :out_f].set(
        weight.T.astype(jnp.float32)).astype(w_dtype)
    hyp_bias = _proj(_expmap0(bias.reshape(1, out_f).astype(jnp.float32), sqrt_c), sqrt_c)
    c_b2 = float(c * jnp.sum(hyp_bias * hyp_bias))        # grid-invariant, baked in
    if out_p != out_f:
        hyp_bias = jnp.zeros((1, out_p), jnp.float32).at[:, :out_f].set(hyp_bias)

    if (n_p, in_pp) == (n, in_f) and x.dtype == x_dtype:
        xp = x                                            # already aligned: no pad copy
    else:
        xp = jnp.zeros((n_p, in_pp), x_dtype).at[:n, :in_f].set(x.astype(x_dtype))

    # ---- specs ----
    x_spec = pl.BlockSpec((tile_n, tk), lambda i, k: (i, k))
    if k_tiles == 1:
        # grid-invariant weight: single-buffer it (halves the dominant VMEM item)
        w_spec = pl.BlockSpec((tk, out_p), lambda i, k: (0, 0),
                              pipeline_mode=pl.Buffered(1))
    else:
        w_spec = pl.BlockSpec((tk, out_p), lambda i, k: (k, 0))
    hb_spec = pl.BlockSpec((1, out_p), lambda i, k: (0, 0),
                           pipeline_mode=pl.Buffered(1))   # grid-invariant

    kernel = functools.partial(hnn_kernel, c=c, c_b2=c_b2, approx_recip=approx_recip)
    out = pl.pallas_call(
        kernel,
        out_shape=jax.ShapeDtypeStruct((n_p, out_p), jnp.float32),
        grid_spec=pltpu.PrefetchScalarGridSpec(
            num_scalar_prefetch=0,
            grid=(n_p // tile_n, k_tiles),
            in_specs=[x_spec, w_spec, hb_spec],
            out_specs=pl.BlockSpec((tile_n, out_p), lambda i, k: (i, 0)),
            scratch_shapes=[pltpu.VMEM((tile_n, 1), jnp.float32)],
        ),
        compiler_params=pltpu.CompilerParams(
            dimension_semantics=("parallel", "arbitrary"),
            vmem_limit_bytes=vmem_limit,
        ),
    )(xp, wt, hyp_bias)

    if (n_p, out_p) == (n, out_f):
        return out
    return out[:n, :out_f]


# ----------------------------- pure-JAX reference (for verification) ----------

def hnn_layer_ref(x, weight, bias, c):
    sqrt_c = math.sqrt(c)
    x_norm = _norm_lastdim(x)
    mx = x @ weight.T
    mx_norm = _norm_lastdim(mx)
    res_c = jnp.tanh(mx_norm / x_norm * _artanh(sqrt_c * x_norm)) * mx / (mx_norm * sqrt_c)
    cond = jnp.all(mx == 0, axis=-1, keepdims=True)
    res = jnp.where(cond, 0.0, res_c)
    res = _proj(res, sqrt_c)
    hyp_bias = _proj(_expmap0(bias.reshape(1, -1), sqrt_c), sqrt_c)
    res = _proj(_mobius_add(res, jnp.broadcast_to(hyp_bias, res.shape), c), sqrt_c)
    xt = jnp.maximum(_logmap0(res, sqrt_c), 0.0)
    return _proj(_expmap0(xt, sqrt_c), sqrt_c)


# ----------------------------- main --------------------------------------------

if __name__ == "__main__":
    C = 1.0
    key = jax.random.PRNGKey(0)
    k1, k2, k3, k4, k5, k6 = jax.random.split(key, 6)

    def make_inputs(kx, kw, kb, n, in_f, out_f, c, tangent_scale):
        # weight: xavier_uniform_ with gain sqrt(2) (matches HypLinear.reset_parameters).
        gain = math.sqrt(2.0)
        bound = gain * math.sqrt(6.0 / (in_f + out_f))
        weight = jax.random.uniform(kw, (out_f, in_f), jnp.float32, -bound, bound)
        # reset_parameters() zeros the bias (making mobius_add a numeric no-op); use a
        # small nonzero bias so the full bias path is exercised.
        bias = 0.05 * jax.random.normal(kb, (out_f,), jnp.float32)
        # Input: valid points on the Poincare ball (expmap0 of random tangent vectors).
        tangent = tangent_scale * jax.random.normal(kx, (n, in_f), jnp.float32)
        x = _proj(_expmap0(tangent, math.sqrt(c)), math.sqrt(c))
        return x, weight, bias

    # --- Test 1: precise path (f32 matmul, exact reciprocals), 2 row grid steps ---
    x, w, b = make_inputs(k1, k2, k3, 16, 32, 32, C, 0.5)
    ref = hnn_layer_ref(x, w, b, C)
    out = jax.block_until_ready(hnn_layer(x, w, b, C))
    assert out.shape == ref.shape
    assert bool(jnp.all(jnp.isfinite(out)))
    assert bool(jnp.allclose(out, ref, atol=1e-4, rtol=1e-4)), \
        float(jnp.max(jnp.abs(out - ref)))

    # --- Test 2: fast path (bf16 weight + bf16-streamed x, approx reciprocal) ---
    out_fast = jax.block_until_ready(
        hnn_layer(x, w, b, C, bf16_matmul=True, approx_recip=True))
    assert out_fast.shape == ref.shape
    assert bool(jnp.all(jnp.isfinite(out_fast)))
    assert bool(jnp.allclose(out_fast, ref, atol=5e-2, rtol=5e-2)), \
        float(jnp.max(jnp.abs(out_fast - ref)))

    # --- Test 3: K-tiled accumulator path (forced tk=128), odd/padded shapes ---
    x3, w3, b3 = make_inputs(k4, k5, k6, 24, 300, 72, C, 0.1)
    ref3 = hnn_layer_ref(x3, w3, b3, C)
    out3 = jax.block_until_ready(hnn_layer(x3, w3, b3, C, force_tk=128))
    assert out3.shape == ref3.shape
    assert bool(jnp.all(jnp.isfinite(out3)))
    assert bool(jnp.allclose(out3, ref3, atol=1e-4, rtol=1e-4)), \
        float(jnp.max(jnp.abs(out3 - ref3)))

    print("KERNEL_OK")
</pallas_src>

<mosaic_0001>
module attributes {stable_mosaic.version = 11 : i64} {
  func.func @hnn_kernel(%arg0: i32, %arg1: i32, %arg2: memref<8x128xf32, #tpu.memory_space<vmem>>, %arg3: memref<128x128xf32, #tpu.memory_space<vmem>>, %arg4: memref<1x128xf32, #tpu.memory_space<vmem>>, %arg5: memref<8x128xf32, #tpu.memory_space<vmem>>, %arg6: memref<8x1xf32, #tpu.memory_space<vmem>>) attributes {dimension_semantics = [#tpu.dimension_semantics<parallel>, #tpu.dimension_semantics<arbitrary>], iteration_bounds = array<i64: 2, 1>, scalar_prefetch = 0 : i64, scratch_operands = 1 : i64, tpu.core_type = #tpu.core_type<tc>, window_params = [{transform_indices = @transform_0, window_bounds = array<i64: 8, 128>}, {pipeline_mode = #tpu.pipeline_mode<synchronous>, transform_indices = @transform_1, window_bounds = array<i64: 128, 128>}, {pipeline_mode = #tpu.pipeline_mode<synchronous>, transform_indices = @transform_2, window_bounds = array<i64: 1, 128>}, {transform_indices = @transform_3, window_bounds = array<i64: 8, 128>}]} {
    %c0_i32 = arith.constant 0 : i32
    %0 = arith.cmpi eq, %arg1, %c0_i32 : i32
    %1 = arith.extui %0 : i1 to i32
    %c0_i32_0 = arith.constant 0 : i32
    %2 = arith.cmpi ne, %1, %c0_i32_0 : i32
    scf.if %2 {
      %cst_15 = arith.constant 0.000000e+00 : f32
      %18 = vector.broadcast %cst_15 : f32 to vector<8x128xf32>
      %c0_16 = arith.constant 0 : index
      %c0_17 = arith.constant 0 : index
      %19 = vector.load %arg5[%c0_16, %c0_17] : memref<8x128xf32, #tpu.memory_space<vmem>>, vector<8x128xf32>
      tpu.vector_store %arg5[%c0_16, %c0_17], %18 {strides = array<i32>} : memref<8x128xf32, #tpu.memory_space<vmem>>, vector<8x128xf32>,
      %cst_18 = arith.constant 0.000000e+00 : f32
      %20 = vector.broadcast %cst_18 : f32 to vector<8x1xf32>
      %c0_19 = arith.constant 0 : index
      %c0_20 = arith.constant 0 : index
      %21 = vector.load %arg6[%c0_19, %c0_20] : memref<8x1xf32, #tpu.memory_space<vmem>>, vector<8x1xf32>
      tpu.vector_store %arg6[%c0_19, %c0_20], %20 {strides = array<i32>} : memref<8x1xf32, #tpu.memory_space<vmem>>, vector<8x1xf32>,
    } else {
    }
    %c0 = arith.constant 0 : index
    %c0_1 = arith.constant 0 : index
    %3 = vector.load %arg2[%c0, %c0_1] : memref<8x128xf32, #tpu.memory_space<vmem>>, vector<8x128xf32>
    %c0_2 = arith.constant 0 : index
    %c0_3 = arith.constant 0 : index
    %4 = vector.load %arg5[%c0_2, %c0_3] : memref<8x128xf32, #tpu.memory_space<vmem>>, vector<8x128xf32>
    %c0_4 = arith.constant 0 : index
    %c0_5 = arith.constant 0 : index
    %5 = vector.load %arg3[%c0_4, %c0_5] : memref<128x128xf32, #tpu.memory_space<vmem>>, vector<128x128xf32>
    %cst = arith.constant dense<0.000000e+00> : vector<8x128xf32>
    %6 = tpu.matmul %3, %5, %cst {dimension_numbers = #tpu.dot_dimension_numbers<[1], [0], [0], [1], [0, 0, 1, 1], [], []>} : vector<8x128xf32>, vector<128x128xf32>, vector<8x128xf32> -> vector<8x128xf32>
    %7 = arith.addf %4, %6 : vector<8x128xf32>
    %c0_6 = arith.constant 0 : index
    %c0_7 = arith.constant 0 : index
    %8 = vector.load %arg5[%c0_6, %c0_7] : memref<8x128xf32, #tpu.memory_space<vmem>>, vector<8x128xf32>
    tpu.vector_store %arg5[%c0_6, %c0_7], %7 {strides = array<i32>} : memref<8x128xf32, #tpu.memory_space<vmem>>, vector<8x128xf32>,
    %c0_8 = arith.constant 0 : index
    %c0_9 = arith.constant 0 : index
    %9 = vector.load %arg6[%c0_8, %c0_9] : memref<8x1xf32, #tpu.memory_space<vmem>>, vector<8x1xf32>
    %10 = arith.mulf %3, %3 : vector<8x128xf32>
    %cst_10 = arith.constant dense<0.000000e+00> : vector<8xf32>
    %11 = vector.multi_reduction <add>, %10, %cst_10 [1] : vector<8x128xf32> to vector<8xf32>
    %12 = vector.shape_cast %11 : vector<8xf32> to vector<8x1xf32>
    %13 = arith.addf %9, %12 : vector<8x1xf32>
    %c0_11 = arith.constant 0 : index
    %c0_12 = arith.constant 0 : index
    %14 = vector.load %arg6[%c0_11, %c0_12] : memref<8x1xf32, #tpu.memory_space<vmem>>, vector<8x1xf32>
    tpu.vector_store %arg6[%c0_11, %c0_12], %13 {strides = array<i32>} : memref<8x1xf32, #tpu.memory_space<vmem>>, vector<8x1xf32>,
    %c0_i32_13 = arith.constant 0 : i32
    %15 = arith.cmpi eq, %arg1, %c0_i32_13 : i32
    %16 = arith.extui %15 : i1 to i32
    %c0_i32_14 = arith.constant 0 : i32
    %17 = arith.cmpi ne, %16, %c0_i32_14 : i32
    scf.if %17 {
      %c0_15 = arith.constant 0 : index
      %c0_16 = arith.constant 0 : index
      %18 = vector.load %arg5[%c0_15, %c0_16] : memref<8x128xf32, #tpu.memory_space<vmem>>, vector<8x128xf32>
      %c0_17 = arith.constant 0 : index
      %c0_18 = arith.constant 0 : index
      %19 = vector.load %arg6[%c0_17, %c0_18] : memref<8x1xf32, #tpu.memory_space<vmem>>, vector<8x1xf32>
      %c0_19 = arith.constant 0 : index
      %c0_20 = arith.constant 0 : index
      %20 = vector.load %arg4[%c0_19, %c0_20] : memref<1x128xf32, #tpu.memory_space<vmem>>, vector<1x128xf32>
      %cst_21 = arith.constant 1.000000e-30 : f32
      %21 = vector.broadcast %cst_21 : f32 to vector<8x1xf32>
      %22 = arith.maximumf %19, %21 : vector<8x1xf32>
      %23 = math.rsqrt %22 : vector<8x1xf32>
      %24 = arith.mulf %22, %23 : vector<8x1xf32>
      %25 = arith.mulf %18, %18 : vector<8x128xf32>
      %cst_22 = arith.constant dense<0.000000e+00> : vector<8xf32>
      %26 = vector.multi_reduction <add>, %25, %cst_22 [1] : vector<8x128xf32> to vector<8xf32>
      %27 = vector.shape_cast %26 : vector<8xf32> to vector<8x1xf32>
      %cst_23 = arith.constant 1.000000e-30 : f32
      %28 = vector.broadcast %cst_23 : f32 to vector<8x1xf32>
      %29 = arith.maximumf %27, %28 : vector<8x1xf32>
      %30 = math.rsqrt %29 : vector<8x1xf32>
      %31 = arith.mulf %29, %30 : vector<8x1xf32>
      %32 = arith.mulf %31, %23 : vector<8x1xf32>
      %cst_24 = arith.constant 1.000000e+00 : f32
      %33 = vector.broadcast %cst_24 : f32 to vector<8x1xf32>
      %34 = arith.mulf %33, %24 : vector<8x1xf32>
      %cst_25 = arith.constant -0.99999988 : f32
      %cst_26 = arith.constant 0.99999988 : f32
      %35 = vector.broadcast %cst_25 : f32 to vector<8x1xf32>
      %36 = arith.maximumf %35, %34 : vector<8x1xf32>
      %37 = vector.broadcast %cst_26 : f32 to vector<8x1xf32>
      %38 = arith.minimumf %37, %36 : vector<8x1xf32>
      %39 = math.log1p %38 : vector<8x1xf32>
      %cst_27 = arith.constant 0.000000e+00 : f32
      %40 = vector.broadcast %cst_27 : f32 to vector<8x1xf32>
      %41 = arith.subf %40, %38 : vector<8x1xf32>
      %42 = math.log1p %41 : vector<8x1xf32>
      %43 = arith.subf %39, %42 : vector<8x1xf32>
      %cst_28 = arith.constant 5.000000e-01 : f32
      %44 = vector.broadcast %cst_28 : f32 to vector<8x1xf32>
      %45 = arith.mulf %44, %43 : vector<8x1xf32>
      %46 = arith.mulf %32, %45 : vector<8x1xf32>
      %47 = math.tanh %46 : vector<8x1xf32>
      %cst_29 = arith.constant 1.000000e+00 : f32
      %48 = vector.broadcast %cst_29 : f32 to vector<8x1xf32>
      %49 = arith.mulf %47, %48 : vector<8x1xf32>
      %cst_30 = arith.constant 0.995999991 : f32
      %50 = vector.broadcast %cst_30 : f32 to vector<8x1xf32>
      %51 = arith.minimumf %49, %50 : vector<8x1xf32>
      %cst_31 = arith.constant 0.000000e+00 : f32
      %52 = vector.broadcast %cst_31 : f32 to vector<8x1xf32>
      %53 = arith.cmpf oeq, %27, %52 : vector<8x1xf32>
      %54 = arith.mulf %51, %30 : vector<8x1xf32>
      %55 = vector.broadcast %54 : vector<8x1xf32> to vector<8x128xf32>
      %56 = arith.mulf %18, %55 : vector<8x128xf32>
      %cst_32 = arith.constant 0.000000e+00 : f32
      %57 = vector.shape_cast %53 : vector<8x1xi1> to vector<8x1xi1>
      %58 = vector.broadcast %57 : vector<8x1xi1> to vector<8x128xi1>
      %59 = vector.broadcast %cst_32 : f32 to vector<8x128xf32>
      %60 = arith.select %58, %59, %56 : vector<8x128xi1>, vector<8x128xf32>
      %61 = arith.mulf %51, %51 : vector<8x1xf32>
      %cst_33 = arith.constant 0.000000e+00 : f32
      %62 = vector.broadcast %cst_33 : f32 to vector<8x1xf32>
      %63 = arith.select %53, %62, %61 : vector<8x1xi1>, vector<8x1xf32>
      %64 = vector.broadcast %20 : vector<1x128xf32> to vector<8x128xf32>
      %65 = arith.mulf %60, %64 : vector<8x128xf32>
      %cst_34 = arith.constant dense<0.000000e+00> : vector<8xf32>
      %66 = vector.multi_reduction <add>, %65, %cst_34 [1] : vector<8x128xf32> to vector<8xf32>
      %67 = vector.shape_cast %66 : vector<8xf32> to vector<8x1xf32>
      %cst_35 = arith.constant 2.000000e+00 : f32
      %68 = vector.broadcast %cst_35 : f32 to vector<8x1xf32>
      %69 = arith.mulf %68, %67 : vector<8x1xf32>
      %cst_36 = arith.constant 1.000000e+00 : f32
      %70 = vector.broadcast %cst_36 : f32 to vector<8x1xf32>
      %71 = arith.addf %70, %69 : vector<8x1xf32>
      %cst_37 = arith.constant 7.351770e-02 : f32
      %72 = vector.broadcast %cst_37 : f32 to vector<8x1xf32>
      %73 = arith.addf %71, %72 : vector<8x1xf32>
      %74 = vector.broadcast %73 : vector<8x1xf32> to vector<8x128xf32>
      %75 = arith.mulf %74, %60 : vector<8x128xf32>
      %cst_38 = arith.constant 1.000000e+00 : f32
      %76 = vector.broadcast %cst_38 : f32 to vector<8x1xf32>
      %77 = arith.mulf %76, %63 : vector<8x1xf32>
      %cst_39 = arith.constant 1.000000e+00 : f32
      %78 = vector.broadcast %cst_39 : f32 to vector<8x1xf32>
      %79 = arith.subf %78, %77 : vector<8x1xf32>
      %80 = vector.broadcast %79 : vector<8x1xf32> to vector<8x128xf32>
      %81 = vector.broadcast %20 : vector<1x128xf32> to vector<8x128xf32>
      %82 = arith.mulf %80, %81 : vector<8x128xf32>
      %83 = arith.addf %75, %82 : vector<8x128xf32>
      %cst_40 = arith.constant 1.000000e+00 : f32
      %84 = vector.broadcast %cst_40 : f32 to vector<8x1xf32>
      %85 = arith.mulf %84, %63 : vector<8x1xf32>
      %cst_41 = arith.constant 7.351770e-02 : f32
      %86 = vector.broadcast %cst_41 : f32 to vector<8x1xf32>
      %87 = arith.mulf %85, %86 : vector<8x1xf32>
      %88 = arith.addf %71, %87 : vector<8x1xf32>
      %cst_42 = arith.constant 1.000000e-15 : f32
      %89 = vector.broadcast %cst_42 : f32 to vector<8x1xf32>
      %90 = arith.maximumf %88, %89 : vector<8x1xf32>
      %cst_43 = arith.constant 1.000000e+00 : f32
      %91 = vector.broadcast %cst_43 : f32 to vector<8x1xf32>
      %92 = arith.divf %91, %90 : vector<8x1xf32>
      %93 = vector.broadcast %92 : vector<8x1xf32> to vector<8x128xf32>
      %94 = arith.mulf %83, %93 : vector<8x128xf32>
      %95 = arith.mulf %94, %94 : vector<8x128xf32>
      %cst_44 = arith.constant dense<0.000000e+00> : vector<8xf32>
      %96 = vector.multi_reduction <add>, %95, %cst_44 [1] : vector<8x128xf32> to vector<8xf32>
      %97 = vector.shape_cast %96 : vector<8xf32> to vector<8x1xf32>
      %cst_45 = arith.constant 1.000000e-30 : f32
      %98 = vector.broadcast %cst_45 : f32 to vector<8x1xf32>
      %99 = arith.maximumf %97, %98 : vector<8x1xf32>
      %100 = math.rsqrt %99 : vector<8x1xf32>
      %101 = arith.mulf %99, %100 : vector<8x1xf32>
      %cst_46 = arith.constant 0.995999991 : f32
      %102 = vector.broadcast %cst_46 : f32 to vector<8x1xf32>
      %103 = arith.cmpf ogt, %101, %102 : vector<8x1xf32>
      %cst_47 = arith.constant 0.995999991 : f32
      %104 = vector.broadcast %cst_47 : f32 to vector<8x1xf32>
      %105 = arith.mulf %104, %100 : vector<8x1xf32>
      %106 = vector.broadcast %105 : vector<8x1xf32> to vector<8x128xf32>
      %107 = arith.mulf %94, %106 : vector<8x128xf32>
      %108 = vector.shape_cast %103 : vector<8x1xi1> to vector<8x1xi1>
      %109 = vector.broadcast %108 : vector<8x1xi1> to vector<8x128xi1>
      %110 = arith.select %109, %107, %94 : vector<8x128xi1>, vector<8x128xf32>
      %cst_48 = arith.constant 0.995999991 : f32
      %111 = vector.broadcast %cst_48 : f32 to vector<8x1xf32>
      %112 = arith.minimumf %101, %111 : vector<8x1xf32>
      %cst_49 = arith.constant 1.00401604 : f32
      %113 = vector.broadcast %cst_49 : f32 to vector<8x1xf32>
      %114 = arith.select %103, %113, %100 : vector<8x1xi1>, vector<8x1xf32>
      %cst_50 = arith.constant 1.000000e+00 : f32
      %115 = vector.broadcast %cst_50 : f32 to vector<8x1xf32>
      %116 = arith.mulf %115, %112 : vector<8x1xf32>
      %cst_51 = arith.constant -0.99999988 : f32
      %cst_52 = arith.constant 0.99999988 : f32
      %117 = vector.broadcast %cst_51 : f32 to vector<8x1xf32>
      %118 = arith.maximumf %117, %116 : vector<8x1xf32>
      %119 = vector.broadcast %cst_52 : f32 to vector<8x1xf32>
      %120 = arith.minimumf %119, %118 : vector<8x1xf32>
      %121 = math.log1p %120 : vector<8x1xf32>
      %cst_53 = arith.constant 0.000000e+00 : f32
      %122 = vector.broadcast %cst_53 : f32 to vector<8x1xf32>
      %123 = arith.subf %122, %120 : vector<8x1xf32>
      %124 = math.log1p %123 : vector<8x1xf32>
      %125 = arith.subf %121, %124 : vector<8x1xf32>
      %cst_54 = arith.constant 5.000000e-01 : f32
      %126 = vector.broadcast %cst_54 : f32 to vector<8x1xf32>
      %127 = arith.mulf %126, %125 : vector<8x1xf32>
      %cst_55 = arith.constant 1.000000e+00 : f32
      %128 = vector.broadcast %cst_55 : f32 to vector<8x1xf32>
      %129 = arith.mulf %114, %128 : vector<8x1xf32>
      %130 = arith.mulf %127, %129 : vector<8x1xf32>
      %131 = vector.broadcast %130 : vector<8x1xf32> to vector<8x128xf32>
      %132 = arith.mulf %110, %131 : vector<8x128xf32>
      %cst_56 = arith.constant 0.000000e+00 : f32
      %133 = vector.broadcast %cst_56 : f32 to vector<8x128xf32>
      %134 = arith.maximumf %132, %133 : vector<8x128xf32>
      %135 = arith.mulf %134, %134 : vector<8x128xf32>
      %cst_57 = arith.constant dense<0.000000e+00> : vector<8xf32>
      %136 = vector.multi_reduction <add>, %135, %cst_57 [1] : vector<8x128xf32> to vector<8xf32>
      %137 = vector.shape_cast %136 : vector<8xf32> to vector<8x1xf32>
      %cst_58 = arith.constant 1.000000e-30 : f32
      %138 = vector.broadcast %cst_58 : f32 to vector<8x1xf32>
      %139 = arith.maximumf %137, %138 : vector<8x1xf32>
      %140 = math.rsqrt %139 : vector<8x1xf32>
      %141 = arith.mulf %139, %140 : vector<8x1xf32>
      %cst_59 = arith.constant 1.000000e+00 : f32
      %142 = vector.broadcast %cst_59 : f32 to vector<8x1xf32>
      %143 = arith.mulf %142, %141 : vector<8x1xf32>
      %144 = math.tanh %143 : vector<8x1xf32>
      %cst_60 = arith.constant 1.000000e+00 : f32
      %145 = vector.broadcast %cst_60 : f32 to vector<8x1xf32>
      %146 = arith.mulf %144, %145 : vector<8x1xf32>
      %cst_61 = arith.constant 0.995999991 : f32
      %147 = vector.broadcast %cst_61 : f32 to vector<8x1xf32>
      %148 = arith.minimumf %146, %147 : vector<8x1xf32>
      %149 = arith.mulf %148, %140 : vector<8x1xf32>
      %150 = vector.broadcast %149 : vector<8x1xf32> to vector<8x128xf32>
      %151 = arith.mulf %134, %150 : vector<8x128xf32>
      %c0_62 = arith.constant 0 : index
      %c0_63 = arith.constant 0 : index
      %152 = vector.load %arg5[%c0_62, %c0_63] : memref<8x128xf32, #tpu.memory_space<vmem>>, vector<8x128xf32>
      tpu.vector_store %arg5[%c0_62, %c0_63], %151 {strides = array<i32>} : memref<8x128xf32, #tpu.memory_space<vmem>>, vector<8x128xf32>,
    } else {
    }
    return
  }
  func.func @transform_0(%arg0: i32, %arg1: i32) -> (i32, i32) {
    %c0_i32 = arith.constant 0 : i32
    return %arg0, %arg1 : i32, i32
  }
  func.func @transform_1(%arg0: i32, %arg1: i32) -> (i32, i32) {
    %c0_i32 = arith.constant 0 : i32
    %c0_i32_0 = arith.constant 0 : i32
    %c0_i32_1 = arith.constant 0 : i32
    return %c0_i32, %c0_i32_0 : i32, i32
  }
  func.func @transform_2(%arg0: i32, %arg1: i32) -> (i32, i32) {
    %c0_i32 = arith.constant 0 : i32
    %c0_i32_0 = arith.constant 0 : i32
    %c0_i32_1 = arith.constant 0 : i32
    return %c0_i32, %c0_i32_0 : i32, i32
  }
  func.func @transform_3(%arg0: i32, %arg1: i32) -> (i32, i32) {
    %c0_i32 = arith.constant 0 : i32
    %c0_i32_0 = arith.constant 0 : i32
    return %arg0, %c0_i32 : i32, i32
  }
}

</mosaic_0001>

<bundles_post_ra>
// kernel: tpu_custom_call.1
= control target key start
LH: loop header
LB: loop body
LE: loop exit
PB: predicated region body
PF: predicated region fallthrough
CT: control target
= control target key end

     0   :  { %8 = vsyncpa [#allocation4], 0  ;;  %s1011_s0 = inlined_call_operand.hbm [shape: f32[16,128], index: 0, kind: input, shape index: {}]   ;;  %s1012_s1 = inlined_call_operand.hbm [shape: f32[128,128], index: 1, kind: input, shape index: {}]   ;;  %s1013_s2 = inlined_call_operand.vmem [shape: f32[1,128], index: 2, kind: input, shape index: {}]   ;;  %s1014_s3 = inlined_call_operand.hbm [shape: f32[16,128], index: 3, kind: output, shape index: {}]  }
   0x1   :  { %10 = vsyncpa [#allocation4 + $0x1], 0 }
   0x2   :  { %11 = vsyncpa [#allocation7], 0 }
   0x3   :  { %12 = vsyncpa [#allocation5], 0 }
   0x4   :  { %14 = vsyncpa [#allocation5 + $0x1], 0  ;;  %s856_s12 = smov 0   ;;  %s858_s13 = smov 0  }
   0x5   :  { %s860_s14 = smov 0   ;;  %s862_s15 = smov 0  }
   0x6   :  { %s864_s16 = smov 0   ;;  %s866_s17 = smov 0  }
   0x7 LB: > { %s563_s18 = sadd.s32 4294967295, %s829_s17   ;;  %p565_p0 = scmp.ge.s32.totalorder %s829_s17, 1  ;;  %s829_s17 = sphi %s866_s17, %s20_s17   ;;  %s825_s16 = sphi %s864_s16, %s1025_s16   ;;  %s821_s15 = sphi %s862_s15, %s1024_s15   ;;  %s817_s14 = sphi %s860_s14, %s1023_s14   ;;  %s813_s13 = sphi %s858_s13, %s1022_s13   ;;  %s809_s12 = sphi %s856_s12, %s1021_s12  }
   0x8   : > { %p888_p1 = scmp.eq.s32.totalorder %s563_s18, 0  ;;  %p133_p2 = scmp.lt.s32.totalorder %s829_s17, 3 }
   0x9   : > { %s144_s22 = sshll.u32 %s1012_s1, 4  ;;  %s831_s24 = smov [#allocation6]   ;;  %s145_s22 = int_to_ptr.hbm [resolvable:$true] %s144_s22 }
   0xa   : > { %p896_p3 = pnand %p565_p0, %p133_p2  ;;  %s146_s25 = sshll.u32 %s831_s24, 4  ;;  %s147_s25 = int_to_ptr.vmem [resolvable:$true] %s146_s25 }
   0xb   : > { %p567_p6 = scmp.ge.s32.totalorder %s829_s17, 2  ;;  %s832_s26 = smov 128  }
   0xc   : > { %p588_p4 = pneg %p896_p3  ;;  %s833_s27 = smov 8  }
   0xd   : > { %s564_s28 = sadd.s32 4294967294, %s829_s17   ;;  %s32_s29 = sadd.s32 1, %s825_s16 }
   0xe   : > { %p589_p5 = pnand %p588_p4, %p888_p1  ;;  %s41_s30 = sadd.s32 1, %s817_s14 }
   0xf   : > { %p34_p7 = scmp.ge.s32.totalorder %s32_s29, 2  ;;  %p48_p8 = scmp.ne.s32.totalorder %s817_s14, %s813_s13 }
  0x10   : > { %591 = dma.hbm_to_vmem [thread:$0]  (!%p589_p5), %s145_s22, 2048, %s147_s25, [#allocation7], %s832_s26, %s832_s26, %s833_s27  }
  0x11   : > { %p49_p9 = scmp.eq.s32.totalorder %s829_s17, 0  ;;  %p54_p10 = scmp.ne.s32.totalorder %s813_s13, %s809_s12 }
  0x12   : > { %s1027_s29 = smov (%p34_p7, %s32_s29), 0  ;;  %p120_p13 = scmp.eq.s32.totalorder %s563_s18, 1 }
  0x13   : > { %p915_p11 = por %p49_p9, %p48_p8  ;;  %p921_p12 = por %p888_p1, %p54_p10 }
  0x14   : > { %s36_s6 = ssub.s32 %s825_s16, %s1027_s29  ;;  %p126_p2 = scmp.eq.s32.totalorder %s564_s28, 1 }
  0x15   : > { %p39_p0 = scmp.eq.s32.totalorder %s36_s6, 0  ;;  %p927_p4 = por %p120_p13, %p48_p8 }
  0x16   : > { %p601_p5 = scmp.lt.s32.totalorder %s829_s17, 2  ;;  %p935_p7 = por %p126_p2, %p54_p10 }
  0x17   : > { %s933_s8 = scalar_select %p39_p0, %s817_s14, %s41_s30  }
  0x18   : > { %s163_s10 = sand.u32 1, %s817_s14   ;;  %s569_s20 = sshll.u32 %s825_s16, 3 }
  0x19   : > { %s568_s11 = sshll.u32 %s163_s10, 3  ;;  %s172_s18 = scalar_lea.hbm %s1011_s0, %s569_s20 }
  0x1a   : > { %s167_s24 = scalar_lea.vmem [#allocation3], %s568_s11  ;;  %s174_s26 = sshll.u32 %s172_s18, 4  ;;  %s175_s26 = int_to_ptr.hbm [resolvable:$true] %s174_s26 }
  0x1b   : > { %s176_s25 = sshll.u32 %s167_s24, 4  ;;  %p593_p8 = pnand %p601_p5, %p915_p11  ;;  %s177_s25 = int_to_ptr.vmem [resolvable:$true] %s176_s25 }
  0x1c   : > { %s164_s27 = scalar_lea.sflag [#allocation4], %s163_s10  ;;  %185 = sbr.rel (%p896_p3) target bundleno = 1027 (0x403), region = 32 }
  0x1d   : > { %595 = dma.hbm_to_vmem [thread:$0]  (!%p593_p8), %s175_s26, 128, %s177_s25, %s164_s27  }
  0x1e   : > { %s949_s28 = sand.u32 (!%p896_p3), 1, %s813_s13  }
  0x1f   : > { %s571_s30 = sshll.u32 (!%p896_p3), %s949_s28, 3  ;;  %s188_s6 = scalar_lea.sflag (!%p896_p3), [#allocation4], %s949_s28 }
  0x20   : > { %s191_s11 = scalar_lea.vmem (!%p896_p3), [#allocation3], %s571_s30 }
  0x21   : > { %796 = dma.done.wait (%p921_p12), %s188_s6, 128  }
  0x22   : > { %798 = vsyncadd (%p921_p12), %s188_s6, 4294967168 }
  0x23   : > { %800 = dma.done.wait (%p888_p1), [#allocation7], 2048  }
  0x24   : > { %802 = vsyncadd (%p888_p1), [#allocation7], 4294965248  ;;  %v244_v0 = vld [vmem:[#allocation6 + $0x78] sm:$0xff]  ;;  %v243_v1 = vld [vmem:[#allocation6 + $0x70] sm:$0xff]  ;;  %vm225_vm0 = vcmask 7168   ;;  %v834_v18 = vmov 0.0  }
  0x25   : > { %245 = vmatpush.msra.mxu0 %v244_v0  ;;  %v242_v2 = vld [vmem:[#allocation6 + $0x68] sm:$0xff]  ;;  %v241_v3 = vld [vmem:[#allocation6 + $0x60] sm:$0xff]  ;;  %v227_v4 = vld [vmem:[%s191_s11] sm:$0xff]  ;;  %226 = vst.msk [vmem:[#allocation2] sm:$0xff] %vm225_vm0, %v834_v18  ;;  %v835_v31 = vmov 0   ;;  %s577_s4 = sshll.u32 %s821_s15, 3 }
  0x26   : > { %v240_v5 = vld [vmem:[#allocation6 + $0x58] sm:$0xff]  ;;  %v268_v6 = vmul.f32 %v227_v4, %v227_v4  ;;  %v239_v7 = vld [vmem:[#allocation6 + $0x50] sm:$0xff]  ;;  %v238_v8 = vld [vmem:[#allocation6 + $0x48] sm:$0xff]  ;;  %657 = vset.pattern.permute.xlu1 %v835_v31  ;;  %658 = vset.pattern.permute.xlu2 %v835_v31  ;;  %s469_s20 = scalar_lea.hbm %s1014_s3, %s577_s4  ;;  %s219_s21 = scalar_lea.vmem [#allocation8], %s571_s30 }
  0x27   : > { %246 = vmatpush.msra.mxu0 %v243_v1  ;;  %v237_v9 = vld [vmem:[#allocation6 + $0x40] sm:$0xff]  ;;  %v236_v10 = vld [vmem:[#allocation6 + $0x38] sm:$0xff]  ;;  %v235_v11 = vld [vmem:[#allocation6 + $0x30] sm:$0xff]  ;;  %659 = vset.pattern.permute.xlu0 %v835_v31  ;;  %s471_s22 = sshll.u32 %s219_s21, 4  ;;  %s473_s18 = sshll.u32 %s469_s20, 4  ;;  %s472_s22 = int_to_ptr.vmem [resolvable:$true] %s471_s22  ;;  %s474_s18 = int_to_ptr.hbm [resolvable:$true] %s473_s18 }
  0x28   : > { %269 = vadd.xlane.f32.xlu0 %v268_v6  ;;  %v234_v12 = vld [vmem:[#allocation6 + $0x28] sm:$0xff]  ;;  %v233_v13 = vld [vmem:[#allocation6 + $0x20] sm:$0xff]  ;;  %v232_v14 = vld [vmem:[#allocation6 + $0x18] sm:$0xff]  ;;  %s459_s24 = scalar_lea.sflag [#allocation5], %s949_s28  ;;  %s757_s25 = sshra.s32 %s474_s18, 4  ;;  %s758_s25 = int_to_ptr.hbm [resolvable:$true] %s757_s25 }
  0x29   : > { %247 = vmatpush.msra.mxu0 %v242_v2  ;;  %v231_v15 = vld [vmem:[#allocation6 + $0x10] sm:$0xff]  ;;  %v230_v16 = vld [vmem:[#allocation6 + $0x8] sm:$0xff]  ;;  %v229_v17 = vld [vmem:[#allocation6] sm:$0xff]  ;;  %s759_s15 = scalar_lea.hbm %s758_s25, 8  ;;  %s763_s6 = scalar_lea.hbm %s1014_s3, 16 }
  0x2a   : > { %p760_p1 = scmp.ne.s32.totalorder %s758_s25, %s759_s15  ;;  %p764_p10 = scmp.lt.s32.totalorder %s758_s25, %s1014_s3 }
  0x2b   : > { %248 = vmatpush.msra.mxu0 %v241_v3  ;;  %p765_p11 = scmp.lt.s32.totalorder %s763_s6, %s759_s15 }
  0x2c   : > { %v267_v20 = vld [vmem:[#allocation2] sm:$0xff]  ;;  %p761_p3 = pnand %p760_p1, %p927_p4 }
  0x2d   : > { %249 = vmatpush.msra.mxu0 %v240_v5  ;;  %p766_p12 = por %p765_p11, %p764_p10 }
  0x2e   : > { %p762_p9 = pneg %p761_p3 }
  0x2f   : > { %250 = vmatpush.msra.mxu0 %v239_v7 }
  0x30   : > { %p767_p13 = pnand %p766_p12, %p762_p9 }
  0x31   : > { %251 = vmatpush.msra.mxu0 %v238_v8 }
  0x33   : > { %252 = vmatpush.msra.mxu0 %v237_v9 }
  0x35   : > { %253 = vmatpush.msra.mxu0 %v236_v10 }
  0x37   : > { %254 = vmatpush.msra.mxu0 %v235_v11  ;;  %v660_v11 = vld [vmem:[%s1013_s2] ss:$0 sm:$0xff] }
  0x39   : > { %255 = vmatpush.msra.mxu0 %v234_v12 }
  0x3b   : > { %256 = vmatpush.msra.mxu0 %v233_v13 }
  0x3d   : > { %257 = vmatpush.msra.mxu0 %v232_v14 }
  0x3f   : > { %258 = vmatpush.msra.mxu0 %v231_v15 }
  0x41   : > { %259 = vmatpush.msra.mxu0 %v230_v16 }
  0x43   : > { %260 = vmatpush.msra.mxu0 %v229_v17 }
  0x44   : > { %261 = vmatmul.f32.vlgmr.msra.gmra.mxu0 %v227_v4 }
  0x9b   : > { %v270_v19 = vpop.xlane.xlu0 %269 }
  0x9c   : > { %v271_v21 = vadd.f32 %v270_v19, %v267_v20 }
  0x9e   : > { %273 = vst.msk [vmem:[#allocation2] sm:$0xff] %vm225_vm0, %v271_v21 }
  0xa5   : > { %v278_v24 = vld [vmem:[#allocation2] sm:$0xff] }
  0xa6   : > { %v280_v25 = vmax.f32 %v278_v24, 1e-30 }
  0xa8   : > { %661 = vrsqrt.f32 %v280_v25  ;;  %vm287_vm1 = vweird.f32 %v280_v25 }
  0xae   : > { %v662_v26 = vpop.eup %661 }
  0xaf   : > { %v282_v27 = vmul.f32 %v662_v26, %v280_v25  ;;  %vm288_vm2 = vweird.f32 %v662_v26 }
  0xb0   : > { %vm289_vm3 = vmor %vm287_vm1, %vm288_vm2 }
  0xb1   : > { %v283_v28 = vmul.f32 %v662_v26, %v282_v27 }
  0xb3   : > { %v284_v29 = vmul.f32 0.5, %v283_v28 }
  0xb5   : > { %v285_v30 = vsub.f32 1.5, %v284_v29 }
  0xb7   : > { %v286_v32 = vmul.f32 %v662_v26, %v285_v30 }
  0xb9   : > { %v290_v33 = vsel %vm289_vm3, %v662_v26, %v286_v32 }
  0xba   : > { %v291_v34 = vmul.f32 %v290_v33, %v280_v25 }
  0xbc   : > { %v574_v35 = vclamps-f32 %v291_v34, 0.9999999 }
  0xbe   : > { %v319_v36 = vsub.f32 0.0, %v574_v35  ;;  %v310_v37 = vadd.f32 1.0, %v574_v35  ;;  %v313_v41 = vmul.f32 -0.5, %v574_v35  ;;  %v316_v48 = vand.u32 2147483647, %v574_v35 }
  0xc0   : > { %v320_v38 = vadd.f32 1.0, %v319_v36  ;;  %663 = vlog2.f32 %v310_v37  ;;  %v323_v42 = vmul.f32 -0.5, %v319_v36  ;;  %v314_v45 = vadd.f32 1.0, %v313_v41 }
  0xc1   : > { %v963_v22 = vpop.f32.mrf.mxu0  ;;  %v326_v49 = vand.u32 2147483647, %v319_v36  ;;  %vm317_vm4 = vcmp.lt.f32.partialorder %v316_v48, 0.0004427343 }
  0xc2   : > { %v292_v23 = vmul.f32 %v963_v22, %v963_v22  ;;  %665 = vlog2.f32 %v320_v38  ;;  %v324_v46 = vadd.f32 1.0, %v323_v42  ;;  %v315_v53 = vmul.f32 %v574_v35, %v314_v45 }
  0xc3   : > { %vm327_vm5 = vcmp.lt.f32.partialorder %v326_v49, 0.0004427343 }
  0xc4   : > { %293 = vadd.xlane.f32.xlu0 %v292_v23  ;;  %v325_v55 = vmul.f32 %v324_v46, %v319_v36 }
  0xc6   : > { %v664_v43 = vpop.eup %663 }
  0xc7   : > { %v312_v51 = vmul.f32 0.6931472, %v664_v43 }
  0xc8   : > { %v666_v44 = vpop.eup %665 }
  0xc9   : > { %v322_v54 = vmul.f32 0.6931472, %v666_v44  ;;  %v318_v58 = vsel %vm317_vm4, %v315_v53, %v312_v51 }
  0xcb   : > { %v328_v59 = vsel %vm327_vm5, %v325_v55, %v322_v54 }
  0xcc   : > { %v329_v61 = vsub.f32 %v318_v58, %v328_v59 }
  0xce   : > { %v330_v1 = vmul.f32 0.5, %v329_v61 }
 0x137   : > { %v294_v39 = vpop.xlane.xlu0 %293 }
 0x138   : > { %v295_v40 = vmax.f32 %v294_v39, 1e-30  ;;  %vm334_vm9 = vcmp.eq.f32.partialorder %v294_v39, 0.0 }
 0x13a   : > { %667 = vrsqrt.f32 %v295_v40  ;;  %vm302_vm7 = vweird.f32 %v295_v40 }
 0x140   : > { %v668_v47 = vpop.eup %667 }
 0x141   : > { %v297_v50 = vmul.f32 %v668_v47, %v295_v40  ;;  %vm303_vm6 = vweird.f32 %v668_v47 }
 0x142   : > { %vm304_vm8 = vmor %vm302_vm7, %vm303_vm6 }
 0x143   : > { %v298_v52 = vmul.f32 %v668_v47, %v297_v50 }
 0x145   : > { %v299_v56 = vmul.f32 0.5, %v298_v52 }
 0x147   : > { %v300_v57 = vsub.f32 1.5, %v299_v56 }
 0x149   : > { %v301_v60 = vmul.f32 %v668_v47, %v300_v57 }
 0x14b   : > { %v305_v62 = vsel %vm304_vm8, %v668_v47, %v301_v60 }
 0x14c   : > { %v306_v63 = vmul.f32 %v305_v62, %v295_v40 }
 0x14e   : > { %v307_v0 = vmul.f32 %v306_v63, %v290_v33 }
 0x150   : > { %v331_v2 = vmul.f32 %v330_v1, %v307_v0 }
 0x152   : > { %669 = vtanh.f32 %v331_v2 }
 0x158   : > { %v670_v3 = vpop.eup %669 }
 0x159   : > { %v333_v4 = vmin.f32 %v670_v3, 0.996 }
 0x15b   : > { %v335_v5 = vmul.f32 %v333_v4, %v305_v62  ;;  %v345_v6 = vmul.f32 %v333_v4, %v333_v4 }
 0x15d   : > { %338 = vperm.xlu1 %657, %v335_v5   ;;  %v346_v7 = vsel %vm334_vm9, 0.0, %v345_v6 }
 0x15e   : > { %v357_v8 = vsub.f32 1.0, %v346_v7  ;;  %v365_v16 = vmul.f32 0.0735177, %v346_v7 }
 0x160   : > { %360 = vperm.xlu2 %658, %v357_v8  }
 0x1ba   : > { %v361_v18 = vpop.permute.xlu2 %360 }
 0x1bb   : > { %v363_v24 = vmul.f32 %v660_v11, %v361_v18 }
 0x1cf   : > { %v339_v9 = vpop.permute.xlu1 %338 }
 0x1d0   : > { %v341_v10 = vmul.f32 %v339_v9, %v963_v22 }
 0x1d2   : > { %v344_v12 = vsel %vm334_vm9, 0.0, %v341_v10 }
 0x1d3   : > { %v350_v13 = vmul.f32 %v660_v11, %v344_v12 }
 0x1d5   : > { %351 = vadd.xlane.f32.xlu1 %v350_v13 }
 0x248   : > { %v352_v14 = vpop.xlane.xlu1 %351 }
 0x249   : > { %v353_v15 = vmul.f32 2.0, %v352_v14 }
 0x24b   : > { %v354_v17 = vadd.f32 1.0, %v353_v15 }
 0x24d   : > { %v355_v19 = vadd.f32 0.0735177, %v354_v17  ;;  %v366_v20 = vadd.f32 %v365_v16, %v354_v17 }
 0x24f   : > { %v356_v21 = vmul.f32 %v355_v19, %v344_v12  ;;  %v367_v23 = vmax.f32 %v366_v20, 1e-15 }
 0x251   : > { %671 = vrcp.f32 %v367_v23  ;;  %v364_v25 = vadd.f32 %v363_v24, %v356_v21  ;;  %v379_v28 = vand.u32 2147483648, %v367_v23  ;;  %v377_v30 = vand.u32 2147483647, %v367_v23 }
 0x252   : > { %vm373_vm11 = vweird.f32 %v367_v23 }
 0x253   : > { %v380_v32 = vor.u32 1.1754944e-38, %v379_v28  ;;  %vm378_vm13 = vcmp.eq.f32.partialorder %v377_v30, 8.507059e+37 }
 0x257   : > { %v672_v22 = vpop.eup %671 }
 0x258   : > { %v369_v26 = vmul.f32 %v672_v22, %v367_v23  ;;  %vm374_vm10 = vweird.f32 %v672_v22 }
 0x259   : > { %vm375_vm12 = vmor %vm373_vm11, %vm374_vm10 }
 0x25a   : > { %v370_v27 = vsub.f32 1.0, %v369_v26 }
 0x25c   : > { %v371_v29 = vmul.f32 %v672_v22, %v370_v27 }
 0x25e   : > { %v372_v31 = vadd.f32 %v672_v22, %v371_v29 }
 0x260   : > { %v376_v33 = vsel %vm375_vm12, %v672_v22, %v372_v31 }
 0x261   : > { %v381_v34 = vsel %vm378_vm13, %v380_v32, %v376_v33 }
 0x262   : > { %385 = vperm.xlu2 %658, %v381_v34  }
 0x2bc   : > { %v386_v35 = vpop.permute.xlu2 %385 }
 0x2bd   : > { %v388_v36 = vmul.f32 %v386_v35, %v364_v25 }
 0x2bf   : > { %v389_v37 = vmul.f32 %v388_v36, %v388_v36 }
 0x2c1   : > { %390 = vadd.xlane.f32.xlu0 %v389_v37 }
 0x334   : > { %v391_v38 = vpop.xlane.xlu0 %390 }
 0x335   : > { %v392_v39 = vmax.f32 %v391_v38, 1e-30 }
 0x337   : > { %673 = vrsqrt.f32 %v392_v39  ;;  %vm399_vm15 = vweird.f32 %v392_v39 }
 0x33d   : > { %v674_v40 = vpop.eup %673 }
 0x33e   : > { %v394_v41 = vmul.f32 %v674_v40, %v392_v39  ;;  %vm400_vm14 = vweird.f32 %v674_v40 }
 0x33f   : > { %vm401_vm0 = vmor %vm399_vm15, %vm400_vm14 }
 0x340   : > { %v395_v42 = vmul.f32 %v674_v40, %v394_v41 }
 0x342   : > { %v396_v43 = vmul.f32 0.5, %v395_v42 }
 0x344   : > { %v397_v44 = vsub.f32 1.5, %v396_v43 }
 0x346   : > { %v398_v45 = vmul.f32 %v674_v40, %v397_v44 }
 0x348   : > { %v402_v46 = vsel %vm401_vm0, %v674_v40, %v398_v45 }
 0x349   : > { %v403_v47 = vmul.f32 %v402_v46, %v392_v39  ;;  %v405_v62 = vmul.f32 0.996, %v402_v46 }
 0x34b   : > { %v410_v48 = vmin.f32 %v403_v47, 0.996  ;;  %vm404_vm3 = vcmp.gt.f32.partialorder %v403_v47, 0.996  ;;  %v406_v5 = vmul.f32 %v405_v62, %v388_v36 }
 0x34c   : > { %v411_v7 = vsel %vm404_vm3, 1.004016, %v402_v46 }
 0x34d   : > { %v575_v49 = vclamps-f32 %v410_v48, 0.9999999  ;;  %v409_v9 = vsel %vm404_vm3, %v406_v5, %v388_v36 }
 0x34f   : > { %v414_v50 = vadd.f32 1.0, %v575_v49  ;;  %v423_v51 = vsub.f32 0.0, %v575_v49  ;;  %v417_v53 = vmul.f32 -0.5, %v575_v49  ;;  %v420_v58 = vand.u32 2147483647, %v575_v49 }
 0x351   : > { %675 = vlog2.f32 %v414_v50  ;;  %v424_v52 = vadd.f32 1.0, %v423_v51  ;;  %v427_v54 = vmul.f32 -0.5, %v423_v51  ;;  %v418_v55 = vadd.f32 1.0, %v417_v53 }
 0x352   : > { %v430_v59 = vand.u32 2147483647, %v423_v51  ;;  %vm421_vm1 = vcmp.lt.f32.partialorder %v420_v58, 0.0004427343 }
 0x353   : > { %677 = vlog2.f32 %v424_v52  ;;  %v428_v56 = vadd.f32 1.0, %v427_v54  ;;  %v419_v63 = vmul.f32 %v575_v49, %v418_v55 }
 0x354   : > { %vm431_vm2 = vcmp.lt.f32.partialorder %v430_v59, 0.0004427343 }
 0x355   : > { %v429_v1 = vmul.f32 %v428_v56, %v423_v51 }
 0x357   : > { %v676_v57 = vpop.eup %675 }
 0x358   : > { %v416_v60 = vmul.f32 0.6931472, %v676_v57 }
 0x359   : > { %v678_v61 = vpop.eup %677 }
 0x35a   : > { %v426_v0 = vmul.f32 0.6931472, %v678_v61  ;;  %v422_v2 = vsel %vm421_vm1, %v419_v63, %v416_v60 }
 0x35c   : > { %v432_v3 = vsel %vm431_vm2, %v429_v1, %v426_v0 }
 0x35d   : > { %v433_v4 = vsub.f32 %v422_v2, %v432_v3 }
 0x35f   : > { %v434_v6 = vmul.f32 0.5, %v433_v4 }
 0x361   : > { %v435_v8 = vmul.f32 %v434_v6, %v411_v7 }
 0x363   : > { %v436_v10 = vmul.f32 %v435_v8, %v409_v9 }
 0x365   : > { %v437_v11 = vmax.f32 %v436_v10, 0.0 }
 0x367   : > { %v438_v12 = vmul.f32 %v437_v11, %v437_v11 }
 0x369   : > { %439 = vadd.xlane.f32.xlu2 %v438_v12 }
 0x3dc   : > { %v440_v13 = vpop.xlane.xlu2 %439 }
 0x3dd   : > { %v441_v14 = vmax.f32 %v440_v13, 1e-30 }
 0x3df   : > { %679 = vrsqrt.f32 %v441_v14  ;;  %vm448_vm5 = vweird.f32 %v441_v14 }
 0x3e5   : > { %v680_v15 = vpop.eup %679 }
 0x3e6   : > { %v443_v16 = vmul.f32 %v680_v15, %v441_v14  ;;  %vm449_vm4 = vweird.f32 %v680_v15 }
 0x3e7   : > { %vm450_vm6 = vmor %vm448_vm5, %vm449_vm4 }
 0x3e8   : > { %v444_v17 = vmul.f32 %v680_v15, %v443_v16 }
 0x3ea   : > { %v445_v18 = vmul.f32 0.5, %v444_v17 }
 0x3ec   : > { %v446_v19 = vsub.f32 1.5, %v445_v18 }
 0x3ee   : > { %v447_v20 = vmul.f32 %v680_v15, %v446_v19 }
 0x3f0   : > { %v451_v21 = vsel %vm450_vm6, %v680_v15, %v447_v20 }
 0x3f1   : > { %v452_v23 = vmul.f32 %v451_v21, %v441_v14 }
 0x3f3   : > { %681 = vtanh.f32 %v452_v23 }
 0x3f9   : > { %v682_v24 = vpop.eup %681 }
 0x3fa   : > { %v454_v25 = vmin.f32 %v682_v24, 0.996 }
 0x3fc   : > { %v455_v22 = vmul.f32 %v454_v25, %v451_v21 }
 0x3fe   : > { %v456_v26 = vmul.f32 %v455_v22, %v437_v11 }
 0x400   : > { %457 = vst [vmem:[%s219_s21] sm:$0xff] %v456_v26 }
 0x401   : > { %770 = shalt.err (!%p767_p13)
}
 0x402   : > { %586 = dma.vmem_to_hbm [thread:$0]  (%p927_p4), %s472_s22, 128, %s474_s18, %s459_s24  }
 0x403 PF: > { %s485_s28 = sand.u32 1, %s809_s12   ;;  %p597_p0 = pnand %p567_p6, %p935_p7 }
 0x404   : > { %s486_s19 = scalar_lea.sflag [#allocation5], %s485_s28 }
 0x405   : > { %p598_p2 = pneg %p597_p0 }
 0x407   : > { %804 = dma.done.wait (%p598_p2), %s486_s19, 128  }
 0x408   : > { %806 = vsyncadd (%p598_p2), %s486_s19, 4294967168  ;;  %s20_s17 = sadd.s32 1, %s829_s17   ;;  %s1021_s12 = smov %s813_s13 }
 0x409   : > { %p17_p5 = scmp.ge.s32.totalorder %s20_s17, 4   ;;  %s1022_s13 = smov %s817_s14 }
 0x40a   : > { %s1023_s14 = smov %s933_s8  ;;  %s1024_s15 = smov %s825_s16 }
 0x40b   : > { %s1025_s16 = smov %s1027_s29  ;;  %19 = sbr.rel (!%p17_p5) target bundleno = 7 (0x7), region = 89 }
 0x410   :  { %492 = vsyncpa [#allocation4], 1 }
 0x411   :  { %494 = vsyncpa [#allocation4 + $0x1], 1 }
 0x412   :  { %495 = vsyncpa [#allocation7], 1 }
 0x413   :  { %496 = vsyncpa [#allocation5], 1 }
 0x414   :  { %498 = vsyncpa [#allocation5 + $0x1], 1 }

</bundles_post_ra>
